<compile_context>
chip_gen: v6e
topology: v6e:2x2x1
jax: 0.10.0
libtpu: 0.0.40
codegen_flags: <defaults>
</compile_context>

<pallas_src>
import jax
import jax.numpy as jnp
from jax.experimental import pallas as pl
from jax.experimental.pallas import tpu as pltpu

_LANE = 128


def _round_up(x, m):
    return ((x + m - 1) // m) * m


def _mlp_softmax_kernel(x_ref, w1_ref, b1_ref, w2_ref, b2_ref, w3_ref, b3_ref,
                        o_ref):
    x = x_ref[...]
    w_dtype = w1_ref.dtype  # matmul input dtype (f32 or bf16)

    # fc1 + relu (f32 accumulate, f32 epilogue)
    h1 = jnp.dot(x, w1_ref[...], preferred_element_type=jnp.float32) + b1_ref[...]
    h1 = jnp.maximum(h1, 0.0)

    # fc2 + relu
    h2 = jnp.dot(h1.astype(w_dtype), w2_ref[...],
                 preferred_element_type=jnp.float32) + b2_ref[...]
    h2 = jnp.maximum(h2, 0.0)

    # fc3 -> narrow (bm, action_dim) logits
    logits = jnp.dot(h2.astype(w_dtype), w3_ref[...],
                     preferred_element_type=jnp.float32) + b3_ref[...]

    # Numerically stable softmax over the (unpadded) action axis.
    # Exact divide: rows sum to 1 to f32 precision; the epilogue runs over
    # only `action_dim` lanes so it is nowhere near the bottleneck.
    m = jnp.max(logits, axis=-1, keepdims=True)
    e = jnp.exp(logits - m)
    denom = jnp.sum(e, axis=-1, keepdims=True)
    o_ref[...] = (e / denom).astype(o_ref.dtype)


def prepare_params(params, compute_dtype=jnp.float32):
    """Pad/cast weights ONCE (hoisted out of the per-call forward wrapper).

    Hidden dim is padded to 128 lanes (lane-dense matmuls; padded hidden
    columns/rows are exact zeros so they never change the result).  The
    action (output) dim is intentionally NOT padded so the HBM-facing output
    stays narrow.  compute_dtype=bf16 is valid on v5e as well as v6e/v7x:
    the MXU takes bf16 inputs natively; accumulation and the relu/softmax
    epilogue stay f32.
    """
    cdt = jnp.dtype(compute_dtype)
    w1, b1 = params["w1"], params["b1"]
    w2, b2 = params["w2"], params["b2"]
    w3, b3 = params["w3"], params["b3"]

    state_dim, hidden_dim = w1.shape
    action_dim = w3.shape[1]
    hidden_p = _round_up(hidden_dim, _LANE)  # keep at 128; don't chase 256-wide MXU

    w1p = jnp.zeros((state_dim, hidden_p), cdt).at[:, :hidden_dim].set(
        w1.astype(cdt))
    b1p = jnp.zeros((1, hidden_p), jnp.float32).at[:, :hidden_dim].set(
        b1.astype(jnp.float32))
    w2p = jnp.zeros((hidden_p, hidden_p), cdt).at[:hidden_dim, :hidden_dim].set(
        w2.astype(cdt))
    b2p = jnp.zeros((1, hidden_p), jnp.float32).at[:, :hidden_dim].set(
        b2.astype(jnp.float32))
    w3p = jnp.zeros((hidden_p, action_dim), cdt).at[:hidden_dim, :].set(
        w3.astype(cdt))
    b3p = b3.reshape(1, action_dim).astype(jnp.float32)

    return {"w1": w1p, "b1": b1p, "w2": w2p, "b2": b2p, "w3": w3p, "b3": b3p}


def bc_policy_discrete_forward(x, pparams, *, block_batch=2048,
                               out_dtype=jnp.float32):
    """Fused MLP + softmax forward.

    x:        (batch, state_dim) float32
    pparams:  output of prepare_params() (padded/cast weights & biases)
    block_batch: rows per grid step (sweep 2048-4096 for large batches)
    out_dtype: probability dtype written to HBM (f32, or bf16 to halve writeback)
    returns   (batch, action_dim) probabilities.
    """
    w1p, b1p = pparams["w1"], pparams["b1"]
    w2p, b2p = pparams["w2"], pparams["b2"]
    w3p, b3p = pparams["w3"], pparams["b3"]

    cdt = w1p.dtype
    batch, state_dim = x.shape
    hidden_p = w1p.shape[1]
    action_dim = w3p.shape[1]

    # ---- batch tiling ---------------------------------------------------
    sublane = 16 if cdt == jnp.bfloat16 else 8
    batch_r = _round_up(batch, sublane)
    # Cap bm so the grid has >=2 steps whenever the batch allows it:
    # v7x has 2 TensorCores and "parallel" only helps with >=2 grid steps.
    half = _round_up(max(batch_r // 2, sublane), sublane)
    bm = max(sublane, min(block_batch, half))
    bm = _round_up(bm, sublane)
    batch_p = _round_up(batch, bm)

    xp = x.astype(cdt)
    if batch_p != batch:
        xp = jnp.pad(xp, ((0, batch_p - batch), (0, 0)))

    grid = (batch_p // bm,)

    # Weights/biases: same block every step -> VMEM-resident, fetched once.
    def resident(a):
        return pl.BlockSpec(a.shape, lambda i: (0, 0))

    itemsize = lambda a: a.size * a.dtype.itemsize
    flops = 2 * batch_p * (state_dim * hidden_p + hidden_p * hidden_p
                           + hidden_p * action_dim)
    out_bytes = batch_p * action_dim * jnp.dtype(out_dtype).itemsize
    bytes_accessed = (itemsize(xp) + itemsize(w1p) + itemsize(b1p)
                      + itemsize(w2p) + itemsize(b2p) + itemsize(w3p)
                      + itemsize(b3p) + out_bytes)

    # VMEM budget: the narrow x/out tiles still occupy (8,128)-tile
    # granularity in VMEM (double-buffered), plus resident weights and the
    # f32 (bm, hidden_p) intermediates.  Cap well under v7x's 64 MiB physical.
    vmem_budget = min(
        48 * 1024 * 1024,
        max(32 * 1024 * 1024, 8 * bm * _LANE * 4 + 4 * hidden_p * hidden_p * 4))

    out = pl.pallas_call(
        _mlp_softmax_kernel,
        out_shape=jax.ShapeDtypeStruct((batch_p, action_dim),
                                       jnp.dtype(out_dtype)),
        grid=grid,
        in_specs=[
            pl.BlockSpec((bm, state_dim), lambda i: (i, 0)),   # x: batch-tiled
            resident(w1p), resident(b1p),
            resident(w2p), resident(b2p),
            resident(w3p), resident(b3p),
        ],
        out_specs=pl.BlockSpec((bm, action_dim), lambda i: (i, 0)),
        compiler_params=pltpu.CompilerParams(
            dimension_semantics=("parallel",),
            vmem_limit_bytes=vmem_budget),
        cost_estimate=pl.CostEstimate(
            flops=flops,
            transcendentals=batch_p * action_dim,
            bytes_accessed=bytes_accessed),
    )(xp, w1p, b1p, w2p, b2p, w3p, b3p)

    # Only the padded batch rows need slicing off; columns are already narrow.
    return out[:batch] if batch_p != batch else out


def init_params(key, state_dim, action_dim, hidden_dim):
    """Deterministic synthetic init (Kaiming-uniform-ish like nn.Linear)."""
    ks = jax.random.split(key, 6)

    def lin(kw, kb, fan_in, fan_out):
        bound = 1.0 / jnp.sqrt(jnp.float32(fan_in))
        w = jax.random.uniform(kw, (fan_in, fan_out), jnp.float32, -bound, bound)
        b = jax.random.uniform(kb, (1, fan_out), jnp.float32, -bound, bound)
        return w, b

    w1, b1 = lin(ks[0], ks[1], state_dim, hidden_dim)
    w2, b2 = lin(ks[2], ks[3], hidden_dim, hidden_dim)
    w3, b3 = lin(ks[4], ks[5], hidden_dim, action_dim)
    return {"w1": w1, "b1": b1, "w2": w2, "b2": b2, "w3": w3, "b3": b3}


def _reference(x, p):
    h1 = jnp.maximum(x @ p["w1"] + p["b1"], 0.0)
    h2 = jnp.maximum(h1 @ p["w2"] + p["b2"], 0.0)
    return jax.nn.softmax(h2 @ p["w3"] + p["b3"], axis=-1)


if __name__ == "__main__":
    key = jax.random.PRNGKey(0)
    k_x, k_x2, k_p = jax.random.split(key, 3)

    state_dim, action_dim, hidden_dim = 4, 4, 32
    params = init_params(k_p, state_dim, action_dim, hidden_dim)

    # Pad / cast the weights ONCE (hoisted out of the per-call wrapper).
    pparams_f32 = prepare_params(params, jnp.float32)

    # --- small batch, f32 path --------------------------------------------
    batch = 8
    x = jax.random.normal(k_x, (batch, state_dim), jnp.float32)
    out = jax.block_until_ready(bc_policy_discrete_forward(x, pparams_f32))
    ref = _reference(x, params)
    assert out.shape == (batch, action_dim)
    assert jnp.allclose(out, ref, atol=2e-3, rtol=2e-3)
    assert jnp.allclose(jnp.sum(out, axis=-1), 1.0, atol=1e-3)

    # --- larger, non-multiple batch: exercises >=2-step grid + row padding -
    batch2 = 1000
    x2 = jax.random.normal(k_x2, (batch2, state_dim), jnp.float32)
    out2 = jax.block_until_ready(bc_policy_discrete_forward(x2, pparams_f32))
    ref2 = _reference(x2, params)
    assert out2.shape == (batch2, action_dim)
    assert jnp.allclose(out2, ref2, atol=2e-3, rtol=2e-3)
    assert jnp.allclose(jnp.sum(out2, axis=-1), 1.0, atol=1e-3)

    # --- bf16 matmul path (valid on v5e/v6e/v7x; f32 accumulate/epilogue) --
    pparams_bf16 = prepare_params(params, jnp.bfloat16)
    out_bf16 = jax.block_until_ready(
        bc_policy_discrete_forward(x2, pparams_bf16))
    assert out_bf16.shape == (batch2, action_dim)
    assert jnp.allclose(out_bf16, ref2, atol=3e-2, rtol=3e-2)

    print("KERNEL_OK")
</pallas_src>

<mosaic_0001>
module attributes {stable_mosaic.version = 11 : i64} {
  func.func @_mlp_softmax_kernel(%arg0: i32, %arg1: memref<8x4xf32, #tpu.memory_space<vmem>>, %arg2: memref<4x128xf32, #tpu.memory_space<vmem>>, %arg3: memref<1x128xf32, #tpu.memory_space<vmem>>, %arg4: memref<128x128xf32, #tpu.memory_space<vmem>>, %arg5: memref<1x128xf32, #tpu.memory_space<vmem>>, %arg6: memref<128x4xf32, #tpu.memory_space<vmem>>, %arg7: memref<1x4xf32, #tpu.memory_space<vmem>>, %arg8: memref<8x4xf32, #tpu.memory_space<vmem>>) attributes {dimension_semantics = [#tpu.dimension_semantics<parallel>], iteration_bounds = array<i64: 1>, scalar_prefetch = 0 : i64, scratch_operands = 0 : i64, tpu.core_type = #tpu.core_type<tc>, window_params = [{transform_indices = @transform_0, window_bounds = array<i64: 8, 4>}, {pipeline_mode = #tpu.pipeline_mode<synchronous>, transform_indices = @transform_1, window_bounds = array<i64: 4, 128>}, {pipeline_mode = #tpu.pipeline_mode<synchronous>, transform_indices = @transform_2, window_bounds = array<i64: 1, 128>}, {pipeline_mode = #tpu.pipeline_mode<synchronous>, transform_indices = @transform_3, window_bounds = array<i64: 128, 128>}, {pipeline_mode = #tpu.pipeline_mode<synchronous>, transform_indices = @transform_4, window_bounds = array<i64: 1, 128>}, {pipeline_mode = #tpu.pipeline_mode<synchronous>, transform_indices = @transform_5, window_bounds = array<i64: 128, 4>}, {pipeline_mode = #tpu.pipeline_mode<synchronous>, transform_indices = @transform_6, window_bounds = array<i64: 1, 4>}, {transform_indices = @transform_7, window_bounds = array<i64: 8, 4>}]} {
    %c0 = arith.constant 0 : index
    %c0_0 = arith.constant 0 : index
    %0 = vector.load %arg1[%c0, %c0_0] : memref<8x4xf32, #tpu.memory_space<vmem>>, vector<8x4xf32>
    %c0_1 = arith.constant 0 : index
    %c0_2 = arith.constant 0 : index
    %1 = vector.load %arg2[%c0_1, %c0_2] : memref<4x128xf32, #tpu.memory_space<vmem>>, vector<4x128xf32>
    %cst = arith.constant dense<0.000000e+00> : vector<8x128xf32>
    %2 = tpu.matmul %0, %1, %cst {dimension_numbers = #tpu.dot_dimension_numbers<[1], [0], [0], [1], [0, 0, 1, 1], [], []>} : vector<8x4xf32>, vector<4x128xf32>, vector<8x128xf32> -> vector<8x128xf32>
    %c0_3 = arith.constant 0 : index
    %c0_4 = arith.constant 0 : index
    %3 = vector.load %arg3[%c0_3, %c0_4] : memref<1x128xf32, #tpu.memory_space<vmem>>, vector<1x128xf32>
    %4 = vector.broadcast %3 : vector<1x128xf32> to vector<8x128xf32>
    %5 = arith.addf %2, %4 : vector<8x128xf32>
    %cst_5 = arith.constant 0.000000e+00 : f32
    %6 = vector.broadcast %cst_5 : f32 to vector<8x128xf32>
    %7 = arith.maximumf %5, %6 : vector<8x128xf32>
    %c0_6 = arith.constant 0 : index
    %c0_7 = arith.constant 0 : index
    %8 = vector.load %arg4[%c0_6, %c0_7] : memref<128x128xf32, #tpu.memory_space<vmem>>, vector<128x128xf32>
    %cst_8 = arith.constant dense<0.000000e+00> : vector<8x128xf32>
    %9 = tpu.matmul %7, %8, %cst_8 {dimension_numbers = #tpu.dot_dimension_numbers<[1], [0], [0], [1], [0, 0, 1, 1], [], []>} : vector<8x128xf32>, vector<128x128xf32>, vector<8x128xf32> -> vector<8x128xf32>
    %c0_9 = arith.constant 0 : index
    %c0_10 = arith.constant 0 : index
    %10 = vector.load %arg5[%c0_9, %c0_10] : memref<1x128xf32, #tpu.memory_space<vmem>>, vector<1x128xf32>
    %11 = vector.broadcast %10 : vector<1x128xf32> to vector<8x128xf32>
    %12 = arith.addf %9, %11 : vector<8x128xf32>
    %cst_11 = arith.constant 0.000000e+00 : f32
    %13 = vector.broadcast %cst_11 : f32 to vector<8x128xf32>
    %14 = arith.maximumf %12, %13 : vector<8x128xf32>
    %c0_12 = arith.constant 0 : index
    %c0_13 = arith.constant 0 : index
    %15 = vector.load %arg6[%c0_12, %c0_13] : memref<128x4xf32, #tpu.memory_space<vmem>>, vector<128x4xf32>
    %cst_14 = arith.constant dense<0.000000e+00> : vector<8x4xf32>
    %16 = tpu.matmul %14, %15, %cst_14 {dimension_numbers = #tpu.dot_dimension_numbers<[1], [0], [0], [1], [0, 0, 1, 1], [], []>} : vector<8x128xf32>, vector<128x4xf32>, vector<8x4xf32> -> vector<8x4xf32>
    %c0_15 = arith.constant 0 : index
    %c0_16 = arith.constant 0 : index
    %17 = vector.load %arg7[%c0_15, %c0_16] : memref<1x4xf32, #tpu.memory_space<vmem>>, vector<1x4xf32>
    %18 = vector.broadcast %17 : vector<1x4xf32> to vector<8x4xf32>
    %19 = arith.addf %16, %18 : vector<8x4xf32>
    %cst_17 = arith.constant dense<0xFF800000> : vector<8xf32>
    %20 = vector.multi_reduction <maximumf>, %19, %cst_17 [1] : vector<8x4xf32> to vector<8xf32>
    %21 = vector.shape_cast %20 : vector<8xf32> to vector<8x1xf32>
    %22 = vector.broadcast %21 : vector<8x1xf32> to vector<8x4xf32>
    %23 = arith.subf %19, %22 : vector<8x4xf32>
    %24 = math.exp %23 : vector<8x4xf32>
    %cst_18 = arith.constant dense<0.000000e+00> : vector<8xf32>
    %25 = vector.multi_reduction <add>, %24, %cst_18 [1] : vector<8x4xf32> to vector<8xf32>
    %26 = vector.shape_cast %25 : vector<8xf32> to vector<8x1xf32>
    %27 = vector.broadcast %26 : vector<8x1xf32> to vector<8x4xf32>
    %28 = arith.divf %24, %27 : vector<8x4xf32>
    %c0_19 = arith.constant 0 : index
    %c0_20 = arith.constant 0 : index
    %29 = vector.load %arg8[%c0_19, %c0_20] : memref<8x4xf32, #tpu.memory_space<vmem>>, vector<8x4xf32>
    tpu.vector_store %arg8[%c0_19, %c0_20], %28 {strides = array<i32>} : memref<8x4xf32, #tpu.memory_space<vmem>>, vector<8x4xf32>,
    return
  }
  func.func @transform_0(%arg0: i32) -> (i32, i32) {
    %c0_i32 = arith.constant 0 : i32
    %c0_i32_0 = arith.constant 0 : i32
    return %arg0, %c0_i32 : i32, i32
  }
  func.func @transform_1(%arg0: i32) -> (i32, i32) {
    %c0_i32 = arith.constant 0 : i32
    %c0_i32_0 = arith.constant 0 : i32
    %c0_i32_1 = arith.constant 0 : i32
    return %c0_i32, %c0_i32_0 : i32, i32
  }
  func.func @transform_2(%arg0: i32) -> (i32, i32) {
    %c0_i32 = arith.constant 0 : i32
    %c0_i32_0 = arith.constant 0 : i32
    %c0_i32_1 = arith.constant 0 : i32
    return %c0_i32, %c0_i32_0 : i32, i32
  }
  func.func @transform_3(%arg0: i32) -> (i32, i32) {
    %c0_i32 = arith.constant 0 : i32
    %c0_i32_0 = arith.constant 0 : i32
    %c0_i32_1 = arith.constant 0 : i32
    return %c0_i32, %c0_i32_0 : i32, i32
  }
  func.func @transform_4(%arg0: i32) -> (i32, i32) {
    %c0_i32 = arith.constant 0 : i32
    %c0_i32_0 = arith.constant 0 : i32
    %c0_i32_1 = arith.constant 0 : i32
    return %c0_i32, %c0_i32_0 : i32, i32
  }
  func.func @transform_5(%arg0: i32) -> (i32, i32) {
    %c0_i32 = arith.constant 0 : i32
    %c0_i32_0 = arith.constant 0 : i32
    %c0_i32_1 = arith.constant 0 : i32
    return %c0_i32, %c0_i32_0 : i32, i32
  }
  func.func @transform_6(%arg0: i32) -> (i32, i32) {
    %c0_i32 = arith.constant 0 : i32
    %c0_i32_0 = arith.constant 0 : i32
    %c0_i32_1 = arith.constant 0 : i32
    return %c0_i32, %c0_i32_0 : i32, i32
  }
  func.func @transform_7(%arg0: i32) -> (i32, i32) {
    %c0_i32 = arith.constant 0 : i32
    %c0_i32_0 = arith.constant 0 : i32
    return %arg0, %c0_i32 : i32, i32
  }
}

</mosaic_0001>

<bundles_post_ra>
// kernel: tpu_custom_call.1
= control target key start
LH: loop header
LB: loop body
LE: loop exit
PB: predicated region body
PF: predicated region fallthrough
CT: control target
= control target key end

     0   :  { %vm39_vm0 = vcmask 1043456   ;;  %vm35_vm1 = vcmask 31744   ;;  %v439_v0 = vmov 0.0   ;;  %vm440_vm2 = vmmov 0   ;;  %s638_s1 = inlined_call_operand.vmem [shape: f32[4,128], index: 1, kind: input, shape index: {}]   ;;  %s639_s0 = inlined_call_operand.vmem [shape: f32[8,4], index: 0, kind: input, shape index: {}]   ;;  %s640_s3 = inlined_call_operand.vmem [shape: f32[128,128], index: 3, kind: input, shape index: {}]   ;;  %s641_s5 = inlined_call_operand.vmem [shape: f32[128,4], index: 5, kind: input, shape index: {}]   ;;  %s642_s2 = inlined_call_operand.vmem [shape: f32[1,128], index: 2, kind: input, shape index: {}]   ;;  %s643_s4 = inlined_call_operand.vmem [shape: f32[1,128], index: 4, kind: input, shape index: {}]   ;;  %s644_s6 = inlined_call_operand.vmem [shape: f32[1,4], index: 6, kind: input, shape index: {}]   ;;  %s645_s7 = inlined_call_operand.vmem [shape: f32[8,4], index: 7, kind: output, shape index: {}]  }
   0x1   :  { %358 = vmatprep.subr.mxu0 %v439_v0  ;;  %v27_v1 = vld [vmem:[%s638_s1] sm:$0xf]  ;;  %360 = vmatprep.mubr.msk.f32.mxu0 %vm440_vm2, %v439_v0  ;;  %v129_v3 = vld [vmem:[%s640_s3 + $0x78] sm:$0xff]  ;;  %v128_v4 = vld [vmem:[%s640_s3 + $0x70] sm:$0xff] }
   0x2   :  { %v26_v2 = vld [vmem:[%s639_s0] sm:$0xff]  ;;  %359 = vmatpush3.msk.msra.mxu0 %vm39_vm0, %v27_v1  ;;  %363 = vmatprep.subr.mxu1 %v439_v0  ;;  %v127_v5 = vld [vmem:[%s640_s3 + $0x68] sm:$0xff]  ;;  %v125_v7 = vld [vmem:[%s640_s3 + $0x58] sm:$0xff] }
   0x3   :  { %361 = vmatmul.mubr.msk.f32.vlgmr.msra.gmra.mxu0 %vm35_vm1, %v26_v2  ;;  %364 = vmatpush3.msra.mxu1 %v129_v3  ;;  %v126_v6 = vld [vmem:[%s640_s3 + $0x60] sm:$0xff]  ;;  %v124_v8 = vld [vmem:[%s640_s3 + $0x50] sm:$0xff]  ;;  %v123_v9 = vld [vmem:[%s640_s3 + $0x48] sm:$0xff] }
   0x4   :  { %365 = vmatprep.subr.mxu1 %v439_v0  ;;  %395 = vmatprep.mubr.msk.f32.mxu1 %vm440_vm2, %v439_v0  ;;  %v122_v10 = vld [vmem:[%s640_s3 + $0x40] sm:$0xff]  ;;  %v121_v11 = vld [vmem:[%s640_s3 + $0x38] sm:$0xff]  ;;  %v120_v12 = vld [vmem:[%s640_s3 + $0x30] sm:$0xff] }
   0x5   :  { %366 = vmatpush3.msra.mxu1 %v128_v4  ;;  %398 = vmatprep.subr.mxu0 %v439_v0  ;;  %v119_v13 = vld [vmem:[%s640_s3 + $0x28] sm:$0xff]  ;;  %v118_v14 = vld [vmem:[%s640_s3 + $0x20] sm:$0xff]  ;;  %v117_v15 = vld [vmem:[%s640_s3 + $0x18] sm:$0xff] }
   0x6   :  { %367 = vmatprep.subr.mxu1 %v439_v0  ;;  %430 = vmatprep.mubr.msk.f32.mxu0 %vm440_vm2, %v439_v0  ;;  %v116_v16 = vld [vmem:[%s640_s3 + $0x10] sm:$0xff]  ;;  %v115_v17 = vld [vmem:[%s640_s3 + $0x8] sm:$0xff]  ;;  %v114_v18 = vld [vmem:[%s640_s3] sm:$0xff] }
   0x7   :  { %368 = vmatpush3.msra.mxu1 %v127_v5  ;;  %v223_v19 = vld [vmem:[%s641_s5 + $0x78] sm:$0xff]  ;;  %v222_v20 = vld [vmem:[%s641_s5 + $0x70] sm:$0xff]  ;;  %v221_v21 = vld [vmem:[%s641_s5 + $0x68] sm:$0xff] }
   0x8   :  { %369 = vmatprep.subr.mxu1 %v439_v0  ;;  %399 = vmatpush3.msra.mxu0 %v223_v19  ;;  %v220_v22 = vld [vmem:[%s641_s5 + $0x60] sm:$0xff]  ;;  %v219_v23 = vld [vmem:[%s641_s5 + $0x58] sm:$0xff]  ;;  %v218_v24 = vld [vmem:[%s641_s5 + $0x50] sm:$0xff] }
   0x9   :  { %370 = vmatpush3.msra.mxu1 %v126_v6  ;;  %400 = vmatprep.subr.mxu0 %v439_v0  ;;  %v217_v25 = vld [vmem:[%s641_s5 + $0x48] sm:$0xff]  ;;  %v216_v26 = vld [vmem:[%s641_s5 + $0x40] sm:$0xff]  ;;  %v215_v27 = vld [vmem:[%s641_s5 + $0x38] sm:$0xff] }
   0xa   :  { %371 = vmatprep.subr.mxu1 %v439_v0  ;;  %401 = vmatpush3.msra.mxu0 %v222_v20  ;;  %v214_v28 = vld [vmem:[%s641_s5 + $0x30] sm:$0xff]  ;;  %v213_v29 = vld [vmem:[%s641_s5 + $0x28] sm:$0xff]  ;;  %v212_v30 = vld [vmem:[%s641_s5 + $0x20] sm:$0xff] }
   0xb   :  { %372 = vmatpush3.msra.mxu1 %v125_v7  ;;  %402 = vmatprep.subr.mxu0 %v439_v0  ;;  %v211_v31 = vld [vmem:[%s641_s5 + $0x18] sm:$0xff]  ;;  %v317_v32 = vld [vmem:[%s642_s2] ss:$0 sm:$0xff]  ;;  %v210_v37 = vld [vmem:[%s641_s5 + $0x10] sm:$0xff] }
   0xc   :  { %373 = vmatprep.subr.mxu1 %v439_v0  ;;  %403 = vmatpush3.msra.mxu0 %v221_v21  ;;  %v209_v38 = vld [vmem:[%s641_s5 + $0x8] sm:$0xff]  ;;  %v208_v39 = vld [vmem:[%s641_s5] sm:$0xff] }
   0xd   :  { %374 = vmatpush3.msra.mxu1 %v124_v8  ;;  %404 = vmatprep.subr.mxu0 %v439_v0  ;;  %v320_v40 = vld [vmem:[%s643_s4] ss:$0 sm:$0xff] }
   0xe   :  { %375 = vmatprep.subr.mxu1 %v439_v0  ;;  %405 = vmatpush3.msra.mxu0 %v220_v22  ;;  %v321_v45 = vld [vmem:[%s644_s6] ss:$0 sm:$0xff] }
   0xf   :  { %376 = vmatpush3.msra.mxu1 %v123_v9  ;;  %406 = vmatprep.subr.mxu0 %v439_v0 }
  0x10   :  { %377 = vmatprep.subr.mxu1 %v439_v0  ;;  %407 = vmatpush3.msra.mxu0 %v219_v23 }
  0x11   :  { %378 = vmatpush3.msra.mxu1 %v122_v10  ;;  %408 = vmatprep.subr.mxu0 %v439_v0 }
  0x12   :  { %379 = vmatprep.subr.mxu1 %v439_v0  ;;  %409 = vmatpush3.msra.mxu0 %v218_v24 }
  0x13   :  { %380 = vmatpush3.msra.mxu1 %v121_v11  ;;  %410 = vmatprep.subr.mxu0 %v439_v0 }
  0x14   :  { %381 = vmatprep.subr.mxu1 %v439_v0  ;;  %411 = vmatpush3.msra.mxu0 %v217_v25 }
  0x15   :  { %382 = vmatpush3.msra.mxu1 %v120_v12  ;;  %412 = vmatprep.subr.mxu0 %v439_v0 }
  0x16   :  { %383 = vmatprep.subr.mxu1 %v439_v0  ;;  %413 = vmatpush3.msra.mxu0 %v216_v26 }
  0x17   :  { %384 = vmatpush3.msra.mxu1 %v119_v13  ;;  %414 = vmatprep.subr.mxu0 %v439_v0 }
  0x18   :  { %385 = vmatprep.subr.mxu1 %v439_v0  ;;  %415 = vmatpush3.msra.mxu0 %v215_v27 }
  0x19   :  { %386 = vmatpush3.msra.mxu1 %v118_v14  ;;  %416 = vmatprep.subr.mxu0 %v439_v0 }
  0x1a   :  { %387 = vmatprep.subr.mxu1 %v439_v0  ;;  %417 = vmatpush3.msra.mxu0 %v214_v28 }
  0x1b   :  { %388 = vmatpush3.msra.mxu1 %v117_v15  ;;  %418 = vmatprep.subr.mxu0 %v439_v0 }
  0x1c   :  { %389 = vmatprep.subr.mxu1 %v439_v0  ;;  %419 = vmatpush3.msra.mxu0 %v213_v29 }
  0x1d   :  { %390 = vmatpush3.msra.mxu1 %v116_v16  ;;  %420 = vmatprep.subr.mxu0 %v439_v0 }
  0x1e   :  { %391 = vmatprep.subr.mxu1 %v439_v0  ;;  %421 = vmatpush3.msra.mxu0 %v212_v30 }
  0x1f   :  { %392 = vmatpush3.msra.mxu1 %v115_v17  ;;  %422 = vmatprep.subr.mxu0 %v439_v0 }
  0x20   :  { %393 = vmatprep.subr.mxu1 %v439_v0  ;;  %423 = vmatpush3.msra.mxu0 %v211_v31 }
  0x21   :  { %394 = vmatpush3.msra.mxu1 %v114_v18  ;;  %424 = vmatprep.subr.mxu0 %v439_v0 }
  0x22   :  { %425 = vmatpush3.msra.mxu0 %v210_v37 }
  0x23   :  { %426 = vmatprep.subr.mxu0 %v439_v0 }
  0x24   :  { %427 = vmatpush3.msra.mxu0 %v209_v38 }
  0x25   :  { %428 = vmatprep.subr.mxu0 %v439_v0 }
  0x26   :  { %429 = vmatpush3.msra.mxu0 %v208_v39 }
  0xc3   :  { %v109_v33 = vpop.f32.mrf.mxu0 }
  0xc4   :  { %v110_v34 = vadd.f32 %v317_v32, %v109_v33 }
  0xc5   :  { %v362_v35 = vpop.f32.mrf.mxu0 }
  0xc6   :  { %v113_v36 = vmax.f32 %v110_v34, 0.0 }
  0xc8   :  { %396 = vmatmul.mubr.f32.vlgmr.msra.gmra.mxu1 %v113_v36 }
 0x188   :  { %v203_v41 = vpop.f32.mrf.mxu1 }
 0x189   :  { %v204_v42 = vadd.f32 %v320_v40, %v203_v41 }
 0x18a   :  { %v397_v43 = vpop.f32.mrf.mxu1 }
 0x18b   :  { %v207_v44 = vmax.f32 %v204_v42, 0.0 }
 0x18d   :  { %431 = vmatmul.mubr.f32.vlgmr.msra.gmra.mxu0 %v207_v44 }
 0x24d   :  { %v297_v46 = vpop.f32.mrf.mxu0 }
 0x24e   :  { %v298_v47 = vadd.f32 %v321_v45, %v297_v46 }
 0x24f   :  { %v432_v48 = vpop.f32.mrf.mxu0 }
 0x250   :  { %v301_v49 = vsel %vm35_vm1, %v298_v47, -inf }
 0x251   :  { %302 = vmax.xlane.f32.xlu0 %v301_v49 }
 0x2da   :  { %v303_v50 = vpop.xlane.xlu0 %302 }
 0x2db   :  { %v304_v51 = vsub.f32 %v298_v47, %v303_v50 }
 0x2dd   :  { %v305_v52 = vmul.f32 1.442695, %v304_v51 }
 0x2df   :  { %435 = vpow2.f32 %v305_v52 }
 0x2ec   :  { %v436_v53 = vpop.eup %435 }
 0x2ed   :  { %v307_v54 = vsel %vm35_vm1, %v436_v53, 0.0 }
 0x2ee   :  { %308 = vadd.xlane.f32.xlu0 %v307_v54 }
 0x377   :  { %v309_v55 = vpop.xlane.xlu0 %308 }
 0x378   :  { %437 = vrcp.f32 %v309_v55 }
 0x385   :  { %v438_v56 = vpop.eup %437 }
 0x386   :  { %v311_v57 = vmul.f32 %v438_v56, %v436_v53 }
 0x388   :  { %312 = vst.msk [vmem:[%s645_s7] sm:$0xff] %vm35_vm1, %v311_v57 }

</bundles_post_ra>
